<compile_context>
chip_gen: v6e
topology: v6e:2x2x1
jax: 0.10.0
libtpu: 0.0.40
codegen_flags: <defaults>
</compile_context>

<pallas_src>
import jax
import jax.numpy as jnp
from jax import lax
from jax.experimental import pallas as pl
from jax.experimental.pallas import tpu as pltpu


def _round_up(x, m):
    return (x + m - 1) // m * m


def _pad2d(a, shape, dtype):
    """Zero-pad `a` to `shape` and cast to `dtype` (no-op if already matching)."""
    if tuple(a.shape) == tuple(shape) and a.dtype == dtype:
        return a
    out = jnp.zeros(shape, dtype)
    return out.at[: a.shape[0], : a.shape[1]].set(a.astype(dtype))


# --------------------------------------------------------------------------
# GEMM1: h = relu(x @ W1^T + b1), contraction over vocab (K) tiled by tile_k.
# grid = (batch tiles, K tiles); K is the reduction axis (last, "arbitrary").
# --------------------------------------------------------------------------
def _gemm1_kernel(x_ref, w1_ref, b1_ref, h_ref, acc_ref):
    # x_ref:  (tile_b, tile_k) bf16
    # w1_ref: (E_pad, tile_k)  bf16   (embedding_layer.weight k-chunk)
    # b1_ref: (1, E_pad)       f32
    # h_ref:  (tile_b, E_pad)  bf16   (resident across k; written at last k)
    # acc_ref:(tile_b, E_pad)  f32    VMEM accumulator
    k = pl.program_id(1)

    @pl.when(k == 0)
    def _():
        acc_ref[...] = jnp.zeros_like(acc_ref)

    # Contract the vocab axis of x with the vocab axis of W1 (x @ W1^T).
    acc_ref[...] += lax.dot_general(
        x_ref[...],
        w1_ref[...],
        dimension_numbers=(((1,), (1,)), ((), ())),
        preferred_element_type=jnp.float32,
    )

    @pl.when(k == pl.num_programs(1) - 1)
    def _():
        # bias + clamp(min=0) in f32, single cast to bf16 for GEMM2's lhs.
        h_ref[...] = jnp.maximum(acc_ref[...] + b1_ref[...], 0.0).astype(h_ref.dtype)


# --------------------------------------------------------------------------
# GEMM2: out = h @ W2_tile^T + b2_tile, contraction over embedding dim.
# grid = (vocab tiles, batch tiles): W2 tile loaded once per vocab tile and
# reused across all batch tiles; both axes independent ("parallel").
# --------------------------------------------------------------------------
def _gemm2_kernel(h_ref, w2_ref, b2_ref, o_ref):
    # h_ref:  (tile_b, E_pad)  bf16
    # w2_ref: (tile_v, E_pad)  bf16   (output_layer.weight rows for this tile)
    # b2_ref: (1, tile_v)      f32
    # o_ref:  (tile_b, tile_v)
    out = lax.dot_general(
        h_ref[...],
        w2_ref[...],
        dimension_numbers=(((1,), (1,)), ((), ())),
        preferred_element_type=jnp.float32,
    )
    o_ref[...] = (out + b2_ref[...]).astype(o_ref.dtype)


def word2vec_forward(x, w1, b1, w2, b2, *, tile_b=None, tile_v=512, tile_k=2048,
                     compute_dtype=jnp.bfloat16):
    """Forward pass of Word2VecNet.

    x : (B, V)                 activations
    w1: (E, V), b1: (E,)       embedding_layer (nn.Linear(V, E))
    w2: (V, E), b2: (V,)       output_layer    (nn.Linear(E, V))
    """
    B, V = x.shape
    E = w1.shape[0]
    assert w1.shape == (E, V), w1.shape
    assert w2.shape == (V, E), w2.shape
    assert b1.shape == (E,), b1.shape
    assert b2.shape == (V,), b2.shape
    out_dtype = x.dtype
    out_bytes = jnp.dtype(out_dtype).itemsize

    # ---- hardware-friendly tiling / padding -------------------------------
    V_pad = _round_up(V, 512)              # multiple of 512 -> tile_v=512 always divides
    E_pad = _round_up(E, 128)

    tile_v = min(_round_up(tile_v, 128), V_pad)
    while V_pad % tile_v:                  # terminates at 128
        tile_v -= 128

    tile_k = min(_round_up(tile_k, 512), V_pad)
    while V_pad % tile_k:                  # terminates at 512 (V_pad % 512 == 0)
        tile_k -= 512

    if tile_b is None:
        if B <= 256:
            tile_b = max(16, _round_up(B, 16))     # bf16 native sublane packing = 16 rows
        else:
            # pick the candidate minimizing batch padding (largest wins ties)
            tile_b = min((128, 256), key=lambda t: (_round_up(B, t), -t))
    tile_b = max(16, _round_up(tile_b, 16))
    B_pad = _round_up(B, tile_b)

    # ---- pad + cast operands (zero padding is semantically inert) ---------
    x_p = _pad2d(x, (B_pad, V_pad), compute_dtype)
    w1_p = _pad2d(w1, (E_pad, V_pad), compute_dtype)
    w2_p = _pad2d(w2, (V_pad, E_pad), compute_dtype)
    b1_p = _pad2d(b1.reshape(1, E), (1, E_pad), jnp.float32)
    b2_p = _pad2d(b2.reshape(1, V), (1, V_pad), jnp.float32)

    MIB = 1 << 20

    # ---- phase 1: h = relu(x @ W1^T + b1) ----------------------------------
    vmem1 = (2 * tile_b * tile_k * 2       # x k-chunks (double-buffered)
             + 2 * E_pad * tile_k * 2      # W1 k-chunks
             + 2 * 8 * E_pad * 4           # b1 (sublane-padded)
             + 2 * tile_b * E_pad * 2      # h output tile
             + tile_b * E_pad * 4)         # f32 accumulator scratch
    vmem1 = min(max(int(vmem1 * 1.5), 32 * MIB), 56 * MIB)  # >= default scoped, <= v7x budget

    cost1 = pl.CostEstimate(
        flops=2 * B_pad * V_pad * E_pad,
        transcendentals=0,
        bytes_accessed=B_pad * V_pad * 2 + E_pad * V_pad * 2 + B_pad * E_pad * 2 + E_pad * 4,
    )

    h = pl.pallas_call(
        _gemm1_kernel,
        out_shape=jax.ShapeDtypeStruct((B_pad, E_pad), compute_dtype),
        grid_spec=pltpu.PrefetchScalarGridSpec(
            num_scalar_prefetch=0,
            grid=(B_pad // tile_b, V_pad // tile_k),
            in_specs=[
                pl.BlockSpec((tile_b, tile_k), lambda i, k: (i, k)),   # x k-chunk
                pl.BlockSpec((E_pad, tile_k), lambda i, k: (0, k)),    # W1 k-chunk
                pl.BlockSpec((1, E_pad), lambda i, k: (0, 0)),         # b1
            ],
            out_specs=pl.BlockSpec((tile_b, E_pad), lambda i, k: (i, 0)),
            scratch_shapes=[pltpu.VMEM((tile_b, E_pad), jnp.float32)],
        ),
        compiler_params=pltpu.CompilerParams(
            dimension_semantics=("parallel", "arbitrary"),   # batch parallel, K is a reduction
            vmem_limit_bytes=vmem1,
        ),
        cost_estimate=cost1,
    )(x_p, w1_p, b1_p)

    # ---- phase 2: out = h @ W2^T + b2 --------------------------------------
    vmem2 = (2 * tile_b * E_pad * 2        # h batch tiles
             + 2 * tile_v * E_pad * 2      # W2 vocab tiles
             + 2 * 8 * tile_v * 4          # b2 tiles (sublane-padded)
             + 2 * tile_b * tile_v * out_bytes)  # output tiles
    vmem2 = min(max(int(vmem2 * 1.5), 32 * MIB), 56 * MIB)

    cost2 = pl.CostEstimate(
        flops=2 * B_pad * V_pad * E_pad,
        transcendentals=0,
        bytes_accessed=B_pad * E_pad * 2 + V_pad * E_pad * 2
        + B_pad * V_pad * out_bytes + V_pad * 4,
    )

    out = pl.pallas_call(
        _gemm2_kernel,
        out_shape=jax.ShapeDtypeStruct((B_pad, V_pad), out_dtype),
        grid_spec=pltpu.PrefetchScalarGridSpec(
            num_scalar_prefetch=0,
            # vocab OUTER: each W2 tile is DMA'd once and reused for every
            # batch tile; the big vocab axis also feeds megacore on v7x even
            # when there is only one batch tile.
            grid=(V_pad // tile_v, B_pad // tile_b),
            in_specs=[
                pl.BlockSpec((tile_b, E_pad), lambda j, i: (i, 0)),    # h batch tile
                pl.BlockSpec((tile_v, E_pad), lambda j, i: (j, 0)),    # W2 vocab tile
                pl.BlockSpec((1, tile_v), lambda j, i: (0, j)),        # b2 vocab tile
            ],
            out_specs=pl.BlockSpec((tile_b, tile_v), lambda j, i: (i, j)),
        ),
        compiler_params=pltpu.CompilerParams(
            dimension_semantics=("parallel", "parallel"),
            vmem_limit_bytes=vmem2,
        ),
        cost_estimate=cost2,
    )(h, w2_p, b2_p)

    return out[:B, :V]


if __name__ == "__main__":
    vocab_size = 256
    embedding_dims = 128
    batch = 8

    key = jax.random.PRNGKey(0)
    kx, kw1, kb1, kw2, kb2 = jax.random.split(key, 5)

    # Deterministic inputs matching nn.Linear shapes.
    x = jax.random.normal(kx, (batch, vocab_size), dtype=jnp.float32)
    lim1 = 1.0 / (vocab_size ** 0.5)
    w1 = jax.random.uniform(kw1, (embedding_dims, vocab_size), jnp.float32, -lim1, lim1)
    b1 = jax.random.uniform(kb1, (embedding_dims,), jnp.float32, -lim1, lim1)
    lim2 = 1.0 / (embedding_dims ** 0.5)
    w2 = jax.random.uniform(kw2, (vocab_size, embedding_dims), jnp.float32, -lim2, lim2)
    b2 = jax.random.uniform(kb2, (vocab_size,), jnp.float32, -lim2, lim2)

    out = word2vec_forward(x, w1, b1, w2, b2)
    out = jax.block_until_ready(out)
    assert out.shape == (batch, vocab_size)
    assert out.dtype == jnp.float32

    # Reference with the same bf16-operand / f32-accumulate numerics.
    xb, w1b, w2b = (a.astype(jnp.bfloat16) for a in (x, w1, w2))
    h_ref = jnp.maximum(
        jnp.dot(xb, w1b.T, preferred_element_type=jnp.float32) + b1, 0.0)
    ref = jnp.dot(h_ref.astype(jnp.bfloat16), w2b.T,
                  preferred_element_type=jnp.float32) + b2
    assert jnp.allclose(out, ref, atol=5e-3, rtol=5e-3), \
        float(jnp.max(jnp.abs(out - ref)))

    # Loose sanity check against the pure-f32 math (bf16 quantization noise only).
    ref_f32 = jnp.maximum(x @ w1.T + b1, 0.0) @ w2.T + b2
    assert jnp.allclose(out, ref_f32, atol=1e-1, rtol=1e-1)

    print("KERNEL_OK")
</pallas_src>

<mosaic_0001>
module attributes {stable_mosaic.version = 11 : i64} {
  func.func @_gemm1_kernel(%arg0: i32, %arg1: i32, %arg2: memref<16x512xbf16, #tpu.memory_space<vmem>>, %arg3: memref<128x512xbf16, #tpu.memory_space<vmem>>, %arg4: memref<1x128xf32, #tpu.memory_space<vmem>>, %arg5: memref<16x128xbf16, #tpu.memory_space<vmem>>, %arg6: memref<16x128xf32, #tpu.memory_space<vmem>>) attributes {dimension_semantics = [#tpu.dimension_semantics<parallel>, #tpu.dimension_semantics<arbitrary>], iteration_bounds = array<i64: 1, 1>, scalar_prefetch = 0 : i64, scratch_operands = 1 : i64, tpu.core_type = #tpu.core_type<tc>, window_params = [{transform_indices = @transform_0, window_bounds = array<i64: 16, 512>}, {transform_indices = @transform_1, window_bounds = array<i64: 128, 512>}, {pipeline_mode = #tpu.pipeline_mode<synchronous>, transform_indices = @transform_2, window_bounds = array<i64: 1, 128>}, {transform_indices = @transform_3, window_bounds = array<i64: 16, 128>}]} {
    %c0_i32 = arith.constant 0 : i32
    %0 = arith.cmpi eq, %arg1, %c0_i32 : i32
    %1 = arith.extui %0 : i1 to i32
    %c0_i32_0 = arith.constant 0 : i32
    %2 = arith.cmpi ne, %1, %c0_i32_0 : i32
    scf.if %2 {
      %cst_10 = arith.constant 0.000000e+00 : f32
      %12 = vector.broadcast %cst_10 : f32 to vector<16x128xf32>
      %c0_11 = arith.constant 0 : index
      %c0_12 = arith.constant 0 : index
      %13 = vector.load %arg6[%c0_11, %c0_12] : memref<16x128xf32, #tpu.memory_space<vmem>>, vector<16x128xf32>
      tpu.vector_store %arg6[%c0_11, %c0_12], %12 {strides = array<i32>} : memref<16x128xf32, #tpu.memory_space<vmem>>, vector<16x128xf32>,
    } else {
    }
    %c0 = arith.constant 0 : index
    %c0_1 = arith.constant 0 : index
    %3 = vector.load %arg6[%c0, %c0_1] : memref<16x128xf32, #tpu.memory_space<vmem>>, vector<16x128xf32>
    %c0_2 = arith.constant 0 : index
    %c0_3 = arith.constant 0 : index
    %4 = vector.load %arg2[%c0_2, %c0_3] : memref<16x512xbf16, #tpu.memory_space<vmem>>, vector<16x512xbf16>
    %c0_4 = arith.constant 0 : index
    %c0_5 = arith.constant 0 : index
    %5 = vector.load %arg3[%c0_4, %c0_5] : memref<128x512xbf16, #tpu.memory_space<vmem>>, vector<128x512xbf16>
    %cst = arith.constant dense<0.000000e+00> : vector<16x128xf32>
    %6 = tpu.matmul %4, %5, %cst {dimension_numbers = #tpu.dot_dimension_numbers<[1], [1], [0], [0], [0, 0, 1, 0], [], []>} : vector<16x512xbf16>, vector<128x512xbf16>, vector<16x128xf32> -> vector<16x128xf32>
    %7 = arith.addf %3, %6 : vector<16x128xf32>
    %c0_6 = arith.constant 0 : index
    %c0_7 = arith.constant 0 : index
    %8 = vector.load %arg6[%c0_6, %c0_7] : memref<16x128xf32, #tpu.memory_space<vmem>>, vector<16x128xf32>
    tpu.vector_store %arg6[%c0_6, %c0_7], %7 {strides = array<i32>} : memref<16x128xf32, #tpu.memory_space<vmem>>, vector<16x128xf32>,
    %c0_i32_8 = arith.constant 0 : i32
    %9 = arith.cmpi eq, %arg1, %c0_i32_8 : i32
    %10 = arith.extui %9 : i1 to i32
    %c0_i32_9 = arith.constant 0 : i32
    %11 = arith.cmpi ne, %10, %c0_i32_9 : i32
    scf.if %11 {
      %c0_10 = arith.constant 0 : index
      %c0_11 = arith.constant 0 : index
      %12 = vector.load %arg6[%c0_10, %c0_11] : memref<16x128xf32, #tpu.memory_space<vmem>>, vector<16x128xf32>
      %c0_12 = arith.constant 0 : index
      %c0_13 = arith.constant 0 : index
      %13 = vector.load %arg4[%c0_12, %c0_13] : memref<1x128xf32, #tpu.memory_space<vmem>>, vector<1x128xf32>
      %14 = vector.broadcast %13 : vector<1x128xf32> to vector<16x128xf32>
      %15 = arith.addf %12, %14 : vector<16x128xf32>
      %cst_14 = arith.constant 0.000000e+00 : f32
      %16 = vector.broadcast %cst_14 : f32 to vector<16x128xf32>
      %17 = arith.maximumf %15, %16 : vector<16x128xf32>
      %18 = arith.truncf %17 : vector<16x128xf32> to vector<16x128xbf16>
      %c0_15 = arith.constant 0 : index
      %c0_16 = arith.constant 0 : index
      %19 = vector.load %arg5[%c0_15, %c0_16] : memref<16x128xbf16, #tpu.memory_space<vmem>>, vector<16x128xbf16>
      tpu.vector_store %arg5[%c0_15, %c0_16], %18 {strides = array<i32>} : memref<16x128xbf16, #tpu.memory_space<vmem>>, vector<16x128xbf16>,
    } else {
    }
    return
  }
  func.func @transform_0(%arg0: i32, %arg1: i32) -> (i32, i32) {
    %c0_i32 = arith.constant 0 : i32
    return %arg0, %arg1 : i32, i32
  }
  func.func @transform_1(%arg0: i32, %arg1: i32) -> (i32, i32) {
    %c0_i32 = arith.constant 0 : i32
    %c0_i32_0 = arith.constant 0 : i32
    return %c0_i32, %arg1 : i32, i32
  }
  func.func @transform_2(%arg0: i32, %arg1: i32) -> (i32, i32) {
    %c0_i32 = arith.constant 0 : i32
    %c0_i32_0 = arith.constant 0 : i32
    %c0_i32_1 = arith.constant 0 : i32
    return %c0_i32, %c0_i32_0 : i32, i32
  }
  func.func @transform_3(%arg0: i32, %arg1: i32) -> (i32, i32) {
    %c0_i32 = arith.constant 0 : i32
    %c0_i32_0 = arith.constant 0 : i32
    return %arg0, %c0_i32 : i32, i32
  }
}

</mosaic_0001>

<bundles_post_ra>
// kernel: tpu_custom_call.1
= control target key start
LH: loop header
LB: loop body
LE: loop exit
PB: predicated region body
PF: predicated region fallthrough
CT: control target
= control target key end

     0   :  { %8 = vsyncpa [#allocation4], 0  ;;  %s610_s0 = inlined_call_operand.hbm [shape: bf16[16,512], index: 0, kind: input, shape index: {}]   ;;  %s611_s1 = inlined_call_operand.hbm [shape: bf16[128,512], index: 1, kind: input, shape index: {}]   ;;  %s612_s2 = inlined_call_operand.vmem [shape: f32[1,128], index: 2, kind: input, shape index: {}]   ;;  %s613_s3 = inlined_call_operand.hbm [shape: bf16[16,128], index: 3, kind: output, shape index: {}]  }
   0x1   :  { %9 = vsyncpa [#allocation7], 0 }
   0x2   :  { %10 = vsyncpa [#allocation5], 0  ;;  %s571_s12 = smov [#allocation3]  }
   0x3   :  { %s16_s13 = sshll.u32 %s571_s12, 4  ;;  %s17_s13 = int_to_ptr.vmem [resolvable:$true] %s16_s13 }
   0x4   :  { %s513_s14 = scalar_lea.vmem %s17_s13, 512  ;;  %p518_p1 = scmp.lt.s32.totalorder %s17_s13, %s17_s13 }
   0x5   :  { %p514_p0 = scmp.ne.s32.totalorder %s17_s13, %s513_s14  ;;  %p519_p2 = scmp.lt.s32.totalorder %s513_s14, %s513_s14 }
   0x7   :  { %p520_p3 = por %p519_p2, %p518_p1 }
   0x9   :  { %p521_p4 = pnand %p520_p3, %p514_p0 }
   0xb   :  { %524 = shalt.err (!%p521_p4)
}
   0xc   :  { %s572_s15 = smov 256   ;;  %s573_s16 = smov 16  }
   0xd   :  { %22 = dma.hbm_to_vmem [thread:$0]  %s610_s0, 512, %s17_s13, [#allocation4], %s572_s15, %s572_s15, %s573_s16  }
   0xe   :  { %s574_s19 = smov [#allocation6]  }
   0xf   :  { %s28_s20 = sshll.u32 %s574_s19, 4  ;;  %s29_s20 = int_to_ptr.vmem [resolvable:$true] %s28_s20 }
  0x10   :  { %s533_s21 = scalar_lea.vmem %s29_s20, 4096  ;;  %p538_p6 = scmp.lt.s32.totalorder %s29_s20, %s29_s20 }
  0x11   :  { %p534_p5 = scmp.ne.s32.totalorder %s29_s20, %s533_s21  ;;  %p539_p7 = scmp.lt.s32.totalorder %s533_s21, %s533_s21 }
  0x13   :  { %p540_p8 = por %p539_p7, %p538_p6 }
  0x15   :  { %p541_p9 = pnand %p540_p8, %p534_p5 }
  0x17   :  { %544 = shalt.err (!%p541_p9)
}
  0x18   :  { %34 = dma.hbm_to_vmem [thread:$0]  %s611_s1, 4096, %s29_s20, [#allocation7], %s572_s15, %s572_s15, %s573_s16  }
  0x19   :  { %565 = dma.done.wait [#allocation4], 512  }
  0x1a   :  { %566 = vsyncadd [#allocation4], 4294966784 }
  0x1b   :  { %567 = dma.done.wait [#allocation7], 4096  }
  0x1c   :  { %568 = vsyncadd [#allocation7], 4294963200  ;;  %v451_v0 = vld [vmem:[#allocation6 + $0xe4] ss:$16 sps:$4 sm:$0xff]   ;;  %v453_v1 = vld [vmem:[#allocation6 + $0xec] ss:$16 sps:$4 sm:$0xff]  }
  0x1d   :  { %268 = vmatprep.subr.bf16.mxu0 %v451_v0  ;;  %v455_v2 = vld [vmem:[#allocation6 + $0xe0] ss:$16 sps:$4 sm:$0xff]   ;;  %v456_v3 = vld [vmem:[#allocation6 + $0xe8] ss:$16 sps:$4 sm:$0xff]   ;;  %309 = vmatprep.subr.bf16.mxu1 %v453_v1  ;;  %v457_v4 = vld [vmem:[#allocation6 + $0xc4] ss:$16 sps:$4 sm:$0xff]  }
  0x1e   :  { %269 = vmatpush1.bf16.xpose.msra.mxu0 %v455_v2  ;;  %310 = vmatpush1.bf16.xpose.msra.mxu1 %v456_v3  ;;  %v459_v5 = vld [vmem:[#allocation6 + $0xcc] ss:$16 sps:$4 sm:$0xff]   ;;  %v461_v6 = vld [vmem:[#allocation6 + $0xc0] ss:$16 sps:$4 sm:$0xff]   ;;  %v462_v7 = vld [vmem:[#allocation6 + $0xc8] ss:$16 sps:$4 sm:$0xff]  }
  0x1f   :  { %270 = vmatprep.subr.bf16.mxu0 %v457_v4  ;;  %311 = vmatprep.subr.bf16.mxu1 %v459_v5  ;;  %v463_v8 = vld [vmem:[#allocation6 + $0xa4] ss:$16 sps:$4 sm:$0xff]   ;;  %v465_v9 = vld [vmem:[#allocation6 + $0xac] ss:$16 sps:$4 sm:$0xff]   ;;  %v467_v10 = vld [vmem:[#allocation6 + $0xa0] ss:$16 sps:$4 sm:$0xff]  }
  0x20   :  { %v468_v11 = vld [vmem:[#allocation6 + $0xa8] ss:$16 sps:$4 sm:$0xff]   ;;  %v469_v12 = vld [vmem:[#allocation6 + $0x84] ss:$16 sps:$4 sm:$0xff]   ;;  %v471_v13 = vld [vmem:[#allocation6 + $0x8c] ss:$16 sps:$4 sm:$0xff]  }
  0x21   :  { %v501_v14 = vld [vmem:[#allocation3 + $0x4] ss:$16 sps:$4 sm:$0xff]   ;;  %v504_v15 = vld [vmem:[#allocation3 + $0xc] ss:$16 sps:$4 sm:$0xff]   ;;  %v473_v16 = vld [vmem:[#allocation6 + $0x80] ss:$16 sps:$4 sm:$0xff]  }
  0x22   :  { %v474_v17 = vld [vmem:[#allocation6 + $0x88] ss:$16 sps:$4 sm:$0xff]   ;;  %300 = vmatprep.mubr.bf16.mxu0 %v501_v14  ;;  %v475_v18 = vld [vmem:[#allocation6 + $0x64] ss:$16 sps:$4 sm:$0xff]   ;;  %v477_v19 = vld [vmem:[#allocation6 + $0x6c] ss:$16 sps:$4 sm:$0xff]   ;;  %341 = vmatprep.mubr.bf16.mxu1 %v504_v15 }
  0x23   :  { %v479_v20 = vld [vmem:[#allocation6 + $0x60] ss:$16 sps:$4 sm:$0xff]   ;;  %v480_v21 = vld [vmem:[#allocation6 + $0x68] ss:$16 sps:$4 sm:$0xff]   ;;  %v481_v22 = vld [vmem:[#allocation6 + $0x44] ss:$16 sps:$4 sm:$0xff]  }
  0x24   :  { %v483_v23 = vld [vmem:[#allocation6 + $0x4c] ss:$16 sps:$4 sm:$0xff]   ;;  %v485_v24 = vld [vmem:[#allocation6 + $0x40] ss:$16 sps:$4 sm:$0xff]   ;;  %v486_v25 = vld [vmem:[#allocation6 + $0x48] ss:$16 sps:$4 sm:$0xff]  }
  0x25   :  { %v487_v26 = vld [vmem:[#allocation6 + $0x24] ss:$16 sps:$4 sm:$0xff]   ;;  %v489_v27 = vld [vmem:[#allocation6 + $0x2c] ss:$16 sps:$4 sm:$0xff]   ;;  %v491_v28 = vld [vmem:[#allocation6 + $0x20] ss:$16 sps:$4 sm:$0xff]  }
  0x26   :  { %271 = vmatpush1.bf16.xpose.msra.mxu0 %v461_v6  ;;  %312 = vmatpush1.bf16.xpose.msra.mxu1 %v462_v7  ;;  %v492_v29 = vld [vmem:[#allocation6 + $0x28] ss:$16 sps:$4 sm:$0xff]   ;;  %v493_v30 = vld [vmem:[#allocation6 + $0x4] ss:$16 sps:$4 sm:$0xff]   ;;  %v495_v31 = vld [vmem:[#allocation6 + $0xc] ss:$16 sps:$4 sm:$0xff]  }
  0x27   :  { %272 = vmatprep.subr.bf16.mxu0 %v463_v8  ;;  %313 = vmatprep.subr.bf16.mxu1 %v465_v9  ;;  %v497_v32 = vld [vmem:[#allocation6] ss:$16 sps:$4 sm:$0xff]   ;;  %v498_v33 = vld [vmem:[#allocation6 + $0x8] ss:$16 sps:$4 sm:$0xff]   ;;  %s575_s24 = smov [#allocation8]  }
  0x28   :  { %v499_v34 = vld [vmem:[#allocation3] ss:$16 sps:$4 sm:$0xff]   ;;  %v502_v35 = vld [vmem:[#allocation3 + $0x8] ss:$16 sps:$4 sm:$0xff]   ;;  %s385_s25 = sshll.u32 %s575_s24, 4  ;;  %s386_s25 = int_to_ptr.vmem [resolvable:$true] %s385_s25 }
  0x29   :  { %v434_v39 = vld [vmem:[%s612_s2] ss:$0 sm:$0xff]  ;;  %s545_s26 = scalar_lea.vmem %s386_s25, 128  ;;  %p550_p11 = scmp.lt.s32.totalorder %s386_s25, %s386_s25 }
  0x2a   :  { %p546_p10 = scmp.ne.s32.totalorder %s386_s25, %s545_s26  ;;  %p551_p12 = scmp.lt.s32.totalorder %s545_s26, %s545_s26 }
  0x2c   :  { %p552_p13 = por %p551_p12, %p550_p11 }
  0x2e   :  { %273 = vmatpush1.bf16.xpose.msra.mxu0 %v467_v10  ;;  %314 = vmatpush1.bf16.xpose.msra.mxu1 %v468_v11  ;;  %p553_p0 = pnand %p552_p13, %p546_p10 }
  0x2f   :  { %274 = vmatprep.subr.bf16.mxu0 %v469_v12  ;;  %315 = vmatprep.subr.bf16.mxu1 %v471_v13 }
  0x36   :  { %275 = vmatpush1.bf16.xpose.msra.mxu0 %v473_v16  ;;  %316 = vmatpush1.bf16.xpose.msra.mxu1 %v474_v17 }
  0x37   :  { %276 = vmatprep.subr.bf16.mxu0 %v475_v18  ;;  %317 = vmatprep.subr.bf16.mxu1 %v477_v19 }
  0x3e   :  { %277 = vmatpush1.bf16.xpose.msra.mxu0 %v479_v20  ;;  %318 = vmatpush1.bf16.xpose.msra.mxu1 %v480_v21 }
  0x3f   :  { %278 = vmatprep.subr.bf16.mxu0 %v481_v22  ;;  %319 = vmatprep.subr.bf16.mxu1 %v483_v23 }
  0x46   :  { %279 = vmatpush1.bf16.xpose.msra.mxu0 %v485_v24  ;;  %320 = vmatpush1.bf16.xpose.msra.mxu1 %v486_v25 }
  0x47   :  { %280 = vmatprep.subr.bf16.mxu0 %v487_v26  ;;  %321 = vmatprep.subr.bf16.mxu1 %v489_v27 }
  0x4e   :  { %281 = vmatpush1.bf16.xpose.msra.mxu0 %v491_v28  ;;  %322 = vmatpush1.bf16.xpose.msra.mxu1 %v492_v29 }
  0x4f   :  { %282 = vmatprep.subr.bf16.mxu0 %v493_v30  ;;  %323 = vmatprep.subr.bf16.mxu1 %v495_v31 }
  0x56   :  { %283 = vmatpush1.bf16.xpose.msra.mxu0 %v497_v32  ;;  %324 = vmatpush1.bf16.xpose.msra.mxu1 %v498_v33 }
  0x5d   :  { %301 = vmatmul.mubr.bf16.vlgmr.msra.gmra.mxu0 %v499_v34  ;;  %342 = vmatmul.mubr.bf16.vlgmr.msra.gmra.mxu1 %v502_v35 }
 0x11d   :  { %v302_v36 = vpop.f32.mrf.mxu0  ;;  %v343_v37 = vpop.f32.mrf.mxu1 }
 0x11e   :  { %v344_v38 = vadd.f32 %v343_v37, %v302_v36 }
 0x11f   :  { %v304_v40 = vpop.f32.mrf.mxu0  ;;  %v345_v41 = vpop.f32.mrf.mxu1 }
 0x120   :  { %v366_v44 = vadd.f32 %v434_v39, %v344_v38 }
 0x121   :  { %v305_v42 = vpop.f32.mrf.mxu0  ;;  %v346_v43 = vpop.f32.mrf.mxu1 }
 0x122   :  { %v347_v45 = vadd.f32 %v346_v43, %v305_v42  ;;  %v368_v49 = vmax.f32 %v366_v44, 0.0 }
 0x123   :  { %v307_v46 = vpop.f32.mrf.mxu0  ;;  %v348_v47 = vpop.f32.mrf.mxu1 }
 0x124   :  { %v367_v48 = vadd.f32 %v434_v39, %v347_v45 }
 0x126   :  { %v369_v50 = vmax.f32 %v367_v48, 0.0 }
 0x128   :  { %v442_v51 = vpack.c.bf16 %v369_v50, %v368_v49 }
 0x12a   :  { %443 = vst [vmem:[#allocation8] sm:$0xff] %v442_v51  }
 0x12b   :  { %556 = shalt.err (!%p553_p0)
}
 0x12c   :  { %s576_s2 = smov 64   ;;  %s577_s27 = smov 4  }
 0x12d   :  { %391 = dma.vmem_to_hbm [thread:$0]  %s386_s25, 128, %s613_s3, [#allocation5], %s576_s2, %s576_s2, %s577_s27  }
 0x12e   :  { %569 = dma.done.wait [#allocation5], 128  }
 0x12f   :  { %570 = vsyncadd [#allocation5], 4294967168 }
 0x130   :  { %395 = vsyncpa [#allocation4], 1 }
 0x131   :  { %396 = vsyncpa [#allocation7], 1 }
 0x132   :  { %397 = vsyncpa [#allocation5], 1 }

</bundles_post_ra>
